<compile_context>
chip_gen: v7x
topology: tpu7x:2x2x1
jax: 0.10.0
libtpu: 0.0.40
codegen_flags: <defaults>
</compile_context>

<pallas_src>
import functools

import jax
import jax.numpy as jnp
from jax.experimental import pallas as pl
from jax.experimental.pallas import tpu as pltpu


def _round_up(x, m):
    return ((x + m - 1) // m) * m


def _cdiv(a, b):
    return (a + b - 1) // b


# ---------------------------------------------------------------------------
# Kernel
# ---------------------------------------------------------------------------
def _ndecoder_kernel(z_ref, w_ref, bias_ref, o_ref, acc_ref, *, approx_sigmoid):
    """One (tb, tn) output tile, accumulated over the K grid axis.

    z_ref    : (tb, tk)  batch tile of z
    w_ref    : (tk, tn)  weight tile in pre-transposed (input_dim, s_len) layout
                         -> lane-dense on the output axis, native MXU feed
    bias_ref : (1,  tn)  fused bias row (L1.bias + b1.weight), f32
    o_ref    : (tb, tn)  output tile
    acc_ref  : (tb, tn)  f32 VMEM accumulator (persists across the K axis)
    """
    k = pl.program_id(2)

    @pl.when(k == 0)
    def _init():
        acc_ref[...] = jnp.zeros_like(acc_ref)

    z = z_ref[...]
    w = w_ref[...]
    if z.dtype != w.dtype:
        # Tiny in-VMEM cast of the activation tile; weights are stored in their
        # compute dtype persistently, so no per-call HBM round trip for W.
        z = z.astype(w.dtype)
    acc_ref[...] += jnp.dot(z, w, preferred_element_type=jnp.float32)

    @pl.when(k == pl.num_programs(2) - 1)
    def _finalize():
        x = acc_ref[...] + bias_ref[...]
        if approx_sigmoid:
            # exp + approximate reciprocal both go to the EUP port, keeping the
            # divide off the VALU slots in this EUP/HBM-bound regime.
            y = pl.reciprocal(1.0 + jnp.exp(-x), approx=True)
        else:
            y = jax.nn.sigmoid(x)
        o_ref[...] = y.astype(o_ref.dtype)


# ---------------------------------------------------------------------------
# One-time parameter preparation (outside the per-step hot path)
# ---------------------------------------------------------------------------
def prepare_ndecoder_params(w1, b1_vec, bw, *, param_dtype=jnp.float32):
    """Fuse the two bias terms and pre-transpose / pre-cast the weight once.

    w1     : (s_len, input_dim)  L1.weight in native PyTorch layout
    b1_vec : (s_len,)            L1.bias
    bw     : (1, s_len)          b1.weight (zero-filled extra bias row)

    Returns:
      w_t      : (input_dim, s_len)  weight, pre-transposed (and optionally
                 cast to bf16 here, once) so every forward call reads it in the
                 MXU-native, lane-dense layout.
      bias_row : (1, s_len) f32 fused bias row.
    """
    s_len = w1.shape[0]
    w_t = jnp.asarray(w1, jnp.float32).T.astype(param_dtype)
    bias_row = (jnp.asarray(b1_vec, jnp.float32)
                + jnp.asarray(bw, jnp.float32).reshape(-1)).reshape(1, s_len)
    return w_t, bias_row


# ---------------------------------------------------------------------------
# Tiling helpers
# ---------------------------------------------------------------------------
def _vmem_budget_bytes():
    """(budget, physical_capacity) for the double-buffered working set."""
    try:
        cap = pltpu.get_tpu_info().vmem_capacity_bytes
    except Exception:  # conservative fallback (v7x-sized)
        cap = 64 * 1024 * 1024
    # ~40% of physical VMEM: ~25 MiB on v7x (64 MiB), capped at 48 MiB on
    # v5e/v6e (128 MiB) to leave headroom for compiler scratch.
    return int(min(0.4 * cap, 48 * 1024 * 1024)), cap


def _pick_tile(dim, align, cap):
    """Multiple of `align`, <= cap, minimizing padded work ceil(dim/t)*t."""
    cap = max(align, (cap // align) * align)
    if dim <= cap:
        return _round_up(dim, align)
    best_t, best_waste = align, None
    t = align
    while t <= cap:
        waste = _cdiv(dim, t) * t - dim
        if best_waste is None or waste < best_waste or (waste == best_waste and t > best_t):
            best_t, best_waste = t, waste
        t += align
    return best_t


def _pick_tk(K, target=512, cap=2048):
    """K-block size: full K when small; else a multiple of 128 dividing K."""
    if K <= max(target, 128):
        return K
    best = None
    for cand in range(128, min(K, cap) + 1, 128):
        if K % cand == 0 and (best is None or abs(cand - target) < abs(best - target)):
            best = cand
    return best if best is not None else K


# ---------------------------------------------------------------------------
# Forward
# ---------------------------------------------------------------------------
def ndecoder_forward(z, w_t, bias_row, *, out_dtype=jnp.float32,
                     approx_sigmoid=False):
    """Fused sigmoid(z @ w_t + bias_row) on TPU.

    z        : (B, input_dim)
    w_t      : (input_dim, s_len)   from prepare_ndecoder_params
    bias_row : (1, s_len) f32       from prepare_ndecoder_params
    """
    B, K = z.shape
    Kw, s_len = w_t.shape
    if Kw != K:
        raise ValueError(f"z has input_dim={K} but w_t has input_dim={Kw}")

    z_item = jnp.dtype(z.dtype).itemsize
    w_item = jnp.dtype(w_t.dtype).itemsize
    out_item = jnp.dtype(out_dtype).itemsize

    budget, vmem_cap = _vmem_budget_bytes()

    # K (input_dim) blocking decouples VMEM from input_dim. tk either divides K
    # evenly (multiple of 128) or equals K, so the contraction axis is never
    # ragged (no garbage ever mixes into valid outputs).
    tk = _pick_tk(K)
    nk = _cdiv(K, tk)

    tb = _pick_tile(B, 8, 512 if nk > 1 else 256)
    tn = _pick_tile(s_len, 128, 2048)

    def footprint(tb_, tn_):
        return (2 * tb_ * tk * z_item          # z block, double buffered
                + 2 * tk * tn_ * w_item        # W block, double buffered
                + 2 * tn_ * 4                  # fused bias row
                + 2 * tb_ * tn_ * out_item     # output block
                + tb_ * tn_ * 4)               # f32 accumulator scratch

    # Shrink tiles until the working set fits the per-generation budget.
    while footprint(tb, tn) > budget and (tb > 8 or tn > 128):
        if nk == 1:
            # W stays resident across the whole batch sweep -> shrinking tb is
            # nearly free (grid-step overhead only); protect tn (lane density
            # and z reuse).
            if tb > 8:
                tb = max(8, _round_up(tb // 2, 8))
            else:
                tn = max(128, _round_up(tn // 2, 128))
        else:
            # With K blocking, W is streamed once per batch tile -> protect tb.
            if tn > 128:
                tn = max(128, _round_up(tn // 2, 128))
            else:
                tb = max(8, _round_up(tb // 2, 8))

    s_blocks = _cdiv(s_len, tn)
    b_blocks = _cdiv(B, tb)

    # v7x megacore: keep >= 2 blocks on the leading (weight) axis when the
    # batch axis is the only parallel work, so the two TensorCores partition W
    # instead of each fetching and holding the full weight.
    if s_blocks == 1 and b_blocks >= 2 and tn >= 256:
        tn = max(128, _round_up(tn // 2, 128))
        s_blocks = _cdiv(s_len, tn)

    grid = (s_blocks, b_blocks, nk)   # weight axis OUTER, batch INNER, K last

    vmem_limit = int(min(max(int(1.25 * footprint(tb, tn)) + (2 << 20), 8 << 20),
                         int(0.85 * vmem_cap)))

    cost = pl.CostEstimate(
        flops=2 * B * K * s_len,
        transcendentals=B * s_len,                       # one exp per sigmoid
        bytes_accessed=(B * K * z_item * s_blocks        # z re-read per W block
                        + K * s_len * w_item * (b_blocks if nk > 1 else 1)
                        + s_len * 4
                        + B * s_len * out_item),
    )

    kernel = functools.partial(_ndecoder_kernel, approx_sigmoid=approx_sigmoid)

    return pl.pallas_call(
        kernel,
        out_shape=jax.ShapeDtypeStruct((B, s_len), out_dtype),
        grid_spec=pltpu.PrefetchScalarGridSpec(
            num_scalar_prefetch=0,
            grid=grid,
            in_specs=[
                pl.BlockSpec((tb, tk), lambda j, i, k: (i, k)),   # z batch tile
                pl.BlockSpec((tk, tn), lambda j, i, k: (k, j)),   # W (K, s_len) tile
                pl.BlockSpec((1, tn), lambda j, i, k: (0, j)),    # fused bias row
            ],
            out_specs=pl.BlockSpec((tb, tn), lambda j, i, k: (i, j)),
            scratch_shapes=[pltpu.VMEM((tb, tn), jnp.float32)],
        ),
        compiler_params=pltpu.CompilerParams(
            dimension_semantics=("parallel", "parallel", "arbitrary"),
            vmem_limit_bytes=vmem_limit,
        ),
        cost_estimate=cost,
    )(z, w_t, bias_row)


def ndecoder_reference(z, w1, b1_vec, bw):
    return jax.nn.sigmoid(z @ w1.T + b1_vec[None, :] + bw)


if __name__ == "__main__":
    # Small shapes consistent with the module's forward:
    #   z: (batch, input_dim) -> output: (batch, s_len)
    B, INPUT_DIM, S_LEN = 8, 32, 256

    key = jax.random.PRNGKey(0)
    kz, kw, kb = jax.random.split(key, 3)

    z = jax.random.normal(kz, (B, INPUT_DIM), dtype=jnp.float32)

    # L1.weight ~ xavier_normal_: std = sqrt(2 / (fan_in + fan_out))
    xavier_std = (2.0 / (INPUT_DIM + S_LEN)) ** 0.5
    w1 = xavier_std * jax.random.normal(kw, (S_LEN, INPUT_DIM), dtype=jnp.float32)
    # L1.bias: PyTorch default U(-1/sqrt(fan_in), 1/sqrt(fan_in))
    bound = 1.0 / (INPUT_DIM ** 0.5)
    b1_vec = jax.random.uniform(kb, (S_LEN,), minval=-bound, maxval=bound,
                                dtype=jnp.float32)
    # b1.weight is fill_(0) in __init__
    bw = jnp.zeros((1, S_LEN), dtype=jnp.float32)

    ref = ndecoder_reference(z, w1, b1_vec, bw)

    # --- f32 weights, exact sigmoid (default path) ---------------------------
    w_t, bias_row = prepare_ndecoder_params(w1, b1_vec, bw)
    out = jax.block_until_ready(ndecoder_forward(z, w_t, bias_row))
    assert out.shape == (B, S_LEN) and out.dtype == jnp.float32
    assert jnp.allclose(out, ref, atol=1e-5, rtol=1e-5), "f32 path mismatch"

    # --- persistently-bf16 weights + bf16 output + approx-reciprocal sigmoid -
    w_t_bf16, bias_row_bf16 = prepare_ndecoder_params(
        w1, b1_vec, bw, param_dtype=jnp.bfloat16)
    out_bf16 = jax.block_until_ready(
        ndecoder_forward(z, w_t_bf16, bias_row_bf16,
                         out_dtype=jnp.bfloat16, approx_sigmoid=True))
    assert out_bf16.shape == (B, S_LEN) and out_bf16.dtype == jnp.bfloat16
    assert jnp.allclose(out_bf16.astype(jnp.float32), ref,
                        atol=2e-2, rtol=2e-2), "bf16 path mismatch"

    print("KERNEL_OK")
</pallas_src>

<mosaic_0001>
module attributes {stable_mosaic.version = 11 : i64} {
  func.func @_ndecoder_kernel(%arg0: i32, %arg1: i32, %arg2: i32, %arg3: memref<8x32xf32, #tpu.memory_space<vmem>>, %arg4: memref<32x256xf32, #tpu.memory_space<vmem>>, %arg5: memref<1x256xf32, #tpu.memory_space<vmem>>, %arg6: memref<8x256xf32, #tpu.memory_space<vmem>>, %arg7: memref<8x256xf32, #tpu.memory_space<vmem>>) attributes {dimension_semantics = [#tpu.dimension_semantics<parallel>, #tpu.dimension_semantics<parallel>, #tpu.dimension_semantics<arbitrary>], iteration_bounds = array<i64: 1, 1, 1>, scalar_prefetch = 0 : i64, scratch_operands = 1 : i64, tpu.core_type = #tpu.core_type<tc>, window_params = [{transform_indices = @transform_0, window_bounds = array<i64: 8, 32>}, {transform_indices = @transform_1, window_bounds = array<i64: 32, 256>}, {transform_indices = @transform_2, window_bounds = array<i64: 1, 256>}, {transform_indices = @transform_3, window_bounds = array<i64: 8, 256>}]} {
    %c0_i32 = arith.constant 0 : i32
    %0 = arith.cmpi eq, %arg2, %c0_i32 : i32
    %1 = arith.extui %0 : i1 to i32
    %c0_i32_0 = arith.constant 0 : i32
    %2 = arith.cmpi ne, %1, %c0_i32_0 : i32
    scf.if %2 {
      %cst_10 = arith.constant 0.000000e+00 : f32
      %12 = vector.broadcast %cst_10 : f32 to vector<8x256xf32>
      %c0_11 = arith.constant 0 : index
      %c0_12 = arith.constant 0 : index
      %13 = vector.load %arg7[%c0_11, %c0_12] : memref<8x256xf32, #tpu.memory_space<vmem>>, vector<8x256xf32>
      tpu.vector_store %arg7[%c0_11, %c0_12], %12 {strides = array<i32>} : memref<8x256xf32, #tpu.memory_space<vmem>>, vector<8x256xf32>,
    } else {
    }
    %c0 = arith.constant 0 : index
    %c0_1 = arith.constant 0 : index
    %3 = vector.load %arg3[%c0, %c0_1] : memref<8x32xf32, #tpu.memory_space<vmem>>, vector<8x32xf32>
    %c0_2 = arith.constant 0 : index
    %c0_3 = arith.constant 0 : index
    %4 = vector.load %arg4[%c0_2, %c0_3] : memref<32x256xf32, #tpu.memory_space<vmem>>, vector<32x256xf32>
    %c0_4 = arith.constant 0 : index
    %c0_5 = arith.constant 0 : index
    %5 = vector.load %arg7[%c0_4, %c0_5] : memref<8x256xf32, #tpu.memory_space<vmem>>, vector<8x256xf32>
    %cst = arith.constant dense<0.000000e+00> : vector<8x256xf32>
    %6 = tpu.matmul %3, %4, %cst {dimension_numbers = #tpu.dot_dimension_numbers<[1], [0], [0], [1], [0, 0, 1, 1], [], []>} : vector<8x32xf32>, vector<32x256xf32>, vector<8x256xf32> -> vector<8x256xf32>
    %7 = arith.addf %5, %6 : vector<8x256xf32>
    %c0_6 = arith.constant 0 : index
    %c0_7 = arith.constant 0 : index
    %8 = vector.load %arg7[%c0_6, %c0_7] : memref<8x256xf32, #tpu.memory_space<vmem>>, vector<8x256xf32>
    tpu.vector_store %arg7[%c0_6, %c0_7], %7 {strides = array<i32>} : memref<8x256xf32, #tpu.memory_space<vmem>>, vector<8x256xf32>,
    %c0_i32_8 = arith.constant 0 : i32
    %9 = arith.cmpi eq, %arg2, %c0_i32_8 : i32
    %10 = arith.extui %9 : i1 to i32
    %c0_i32_9 = arith.constant 0 : i32
    %11 = arith.cmpi ne, %10, %c0_i32_9 : i32
    scf.if %11 {
      %c0_10 = arith.constant 0 : index
      %c0_11 = arith.constant 0 : index
      %12 = vector.load %arg7[%c0_10, %c0_11] : memref<8x256xf32, #tpu.memory_space<vmem>>, vector<8x256xf32>
      %c0_12 = arith.constant 0 : index
      %c0_13 = arith.constant 0 : index
      %13 = vector.load %arg5[%c0_12, %c0_13] : memref<1x256xf32, #tpu.memory_space<vmem>>, vector<1x256xf32>
      %14 = vector.broadcast %13 : vector<1x256xf32> to vector<8x256xf32>
      %15 = arith.addf %12, %14 : vector<8x256xf32>
      %16 = arith.negf %15 : vector<8x256xf32>
      %17 = math.exp %16 : vector<8x256xf32>
      %cst_14 = arith.constant 1.000000e+00 : f32
      %18 = vector.broadcast %cst_14 : f32 to vector<8x256xf32>
      %19 = arith.addf %18, %17 : vector<8x256xf32>
      %20 = arith.divf %18, %19 : vector<8x256xf32>
      %c0_15 = arith.constant 0 : index
      %c0_16 = arith.constant 0 : index
      %21 = vector.load %arg6[%c0_15, %c0_16] : memref<8x256xf32, #tpu.memory_space<vmem>>, vector<8x256xf32>
      tpu.vector_store %arg6[%c0_15, %c0_16], %20 {strides = array<i32>} : memref<8x256xf32, #tpu.memory_space<vmem>>, vector<8x256xf32>,
    } else {
    }
    return
  }
  func.func @transform_0(%arg0: i32, %arg1: i32, %arg2: i32) -> (i32, i32) {
    %c0_i32 = arith.constant 0 : i32
    return %arg1, %arg2 : i32, i32
  }
  func.func @transform_1(%arg0: i32, %arg1: i32, %arg2: i32) -> (i32, i32) {
    %c0_i32 = arith.constant 0 : i32
    return %arg2, %arg0 : i32, i32
  }
  func.func @transform_2(%arg0: i32, %arg1: i32, %arg2: i32) -> (i32, i32) {
    %c0_i32 = arith.constant 0 : i32
    %c0_i32_0 = arith.constant 0 : i32
    return %c0_i32, %arg0 : i32, i32
  }
  func.func @transform_3(%arg0: i32, %arg1: i32, %arg2: i32) -> (i32, i32) {
    %c0_i32 = arith.constant 0 : i32
    return %arg1, %arg0 : i32, i32
  }
}

</mosaic_0001>

<bundles_post_ra>
// kernel: tpu_custom_call.1
= control target key start
LH: loop header
LB: loop body
LE: loop exit
PB: predicated region body
PF: predicated region fallthrough
CT: control target
= control target key end

     0   :  { %8 = vsyncpa [#allocation4], 0  ;;  %s355_s0 = inlined_call_operand.hbm [shape: f32[8,32], index: 0, kind: input, shape index: {}]   ;;  %s356_s1 = inlined_call_operand.hbm [shape: f32[32,256], index: 1, kind: input, shape index: {}]   ;;  %s357_s2 = inlined_call_operand.vmem [shape: f32[1,256], index: 2, kind: input, shape index: {}]   ;;  %s358_s3 = inlined_call_operand.hbm [shape: f32[8,256], index: 3, kind: output, shape index: {}]  }
   0x1   :  { %9 = vsyncpa [#allocation7], 0 }
   0x2   :  { %10 = vsyncpa [#allocation5], 0  ;;  %s283_s12 = smov [#allocation3]   ;;  %s284_s14 = smov [#allocation6]  }
   0x3   :  { %s17_s13 = sshll.u32 %s283_s12, 4  ;;  %s26_s15 = sshll.u32 %s284_s14, 4  ;;  %s18_s13 = int_to_ptr.vmem [resolvable:$true] %s17_s13  ;;  %s309_s15 = int_to_ptr.vmem [resolvable:$true] %s26_s15 }
   0x4   :  { %s211_s18 = scalar_lea.hbm %s355_s0, 128 }
   0x5   :  { %p212_p0 = scmp.ne.s32.totalorder %s355_s0, %s211_s18  ;;  %p215_p1 = scmp.lt.u32.totalorder %s211_s18, %s355_s0 }
   0x7   :  { %p217_p2 = pnand %p215_p1, %p212_p0 }
   0x9   :  { %220 = shalt.err (!%p217_p2)
}
   0xa   :  { %s221_s23 = scalar_lea.vmem %s18_s13, 128  ;;  %p226_p4 = scmp.lt.s32.totalorder %s18_s13, %s18_s13 }
   0xb   :  { %p222_p3 = scmp.ne.s32.totalorder %s18_s13, %s221_s23  ;;  %p227_p5 = scmp.lt.s32.totalorder %s221_s23, %s221_s23 }
   0xd   :  { %p228_p6 = por %p227_p5, %p226_p4 }
   0xf   :  { %p229_p7 = pnand %p228_p6, %p222_p3 }
  0x11   :  { %232 = shalt.err (!%p229_p7)
}
  0x12   :  { %20 = dma.hbm_to_vmem [thread:$0]  %s355_s0, 128, %s18_s13, [#allocation4]  }
  0x13   :  { %s233_s28 = scalar_lea.hbm %s356_s1, 1024 }
  0x14   :  { %p234_p8 = scmp.ne.s32.totalorder %s356_s1, %s233_s28  ;;  %p237_p9 = scmp.lt.u32.totalorder %s233_s28, %s356_s1 }
  0x16   :  { %p239_p10 = pnand %p237_p9, %p234_p8 }
  0x18   :  { %242 = shalt.err (!%p239_p10)
}
  0x19   :  { %s243_s6 = scalar_lea.vmem %s309_s15, 1024  ;;  %p248_p12 = scmp.lt.s32.totalorder %s309_s15, %s309_s15 }
  0x1a   :  { %p244_p11 = scmp.ne.s32.totalorder %s309_s15, %s243_s6  ;;  %p249_p13 = scmp.lt.s32.totalorder %s243_s6, %s243_s6 }
  0x1c   :  { %p250_p0 = por %p249_p13, %p248_p12 }
  0x1e   :  { %p251_p1 = pnand %p250_p0, %p244_p11 }
  0x20   :  { %254 = shalt.err (!%p251_p1)
}
  0x21   :  { %s285_s0 = smov 256   ;;  %s286_s7 = smov 16  }
  0x22   :  { %32 = dma.hbm_to_vmem [thread:$0]  %s356_s1, 1024, %s309_s15, [#allocation7], %s285_s0, %s285_s0, %s286_s7  }
  0x23   :  { %277 = dma.done.wait [#allocation4], 128  }
  0x24   :  { %278 = vsyncadd [#allocation4], 4294967168 }
  0x25   :  { %279 = dma.done.wait [#allocation7], 1024  }
  0x26   :  { %280 = vsyncadd [#allocation7], 4294966272  ;;  %v287_v0 = vmov 0.0   ;;  %v49_v1 = vld [vmem:[#allocation6 + $0x8] sm:$0xff]  ;;  %v51_v2 = vld [vmem:[#allocation6 + $0x18] sm:$0xff]  ;;  %vm58_vm0 = vcmask 261120   ;;  %v144_v14 = vlaneseq }
  0x27   :  { %126 = vmatprep.mubr.f32.mxu0 %v287_v0  ;;  %v48_v3 = vld [vmem:[#allocation6] sm:$0xff]  ;;  %v189_v4 = vpack.c.bf16 %v51_v2, %v49_v1  ;;  %v50_v5 = vld [vmem:[#allocation6 + $0x10] sm:$0xff]  ;;  %v53_v6 = vld [vmem:[#allocation6 + $0x28] sm:$0xff]  ;;  %s288_s11 = smov [#allocation8]  }
  0x28   :  { %v55_v7 = vld [vmem:[#allocation6 + $0x38] sm:$0xff]  ;;  %v191_v8 = vpack.c.bf16 %v50_v5, %v48_v3  ;;  %v52_v10 = vld [vmem:[#allocation6 + $0x20] sm:$0xff]  ;;  %v54_v11 = vld [vmem:[#allocation6 + $0x30] sm:$0xff]  ;;  %v145_v15 = vshrl.u32 %v144_v14, 7  ;;  %s176_s12 = sshll.u32 %s288_s11, 4  ;;  %s177_s12 = int_to_ptr.vmem [resolvable:$true] %s176_s12 }
  0x29   :  { %v193_v9 = vpack.c.bf16 %v55_v7, %v53_v6  ;;  %190 = vmatprep.subr.bf16.mxu0 %v189_v4  ;;  %v195_v12 = vpack.c.bf16 %v54_v11, %v52_v10  ;;  %v47_v13 = vld [vmem:[#allocation3] sm:$0xff]  ;;  %p260_p3 = scmp.lt.s32.totalorder %s177_s12, %s177_s12 }
  0x2a   :  { %192 = vmatpush1.bf16.msra.mxu0 %v191_v8  ;;  %v146_v16 = vsub.s32 0, %v145_v15  ;;  %v142_v17 = vld [vmem:[%s357_s2] sm:$0x3]  ;;  %v150_v18 = vsub.s32 1, %v145_v15  ;;  %s255_s2 = scalar_lea.vmem %s177_s12, 256 }
  0x2b   :  { %194 = vmatprep.subr.bf16.mxu0 %v193_v9  ;;  %p256_p2 = scmp.ne.s32.totalorder %s177_s12, %s255_s2  ;;  %p261_p4 = scmp.lt.s32.totalorder %s255_s2, %s255_s2 }
  0x2c   :  { %v147_v19 = vrot.slane %v142_v17, %v146_v16  ;;  %v151_v20 = vrot.slane %v142_v17, %v150_v18 }
  0x2d   :  { %p262_p5 = por %p261_p4, %p260_p3 }
  0x2e   :  { %196 = vmatpush1.bf16.msra.mxu0 %v195_v12 }
  0x2f   :  { %p263_p6 = pnand %p262_p5, %p256_p2 }
  0x31   :  { %186 = vmatmul.mubr.msk.f32.vlgmr.msra.gmra.mrb[0].mxu0 %vm58_vm0, %v47_v13 }
 0x104   :  { %v128_v21 = vpop.f32.mrb[0].mxu0 }
 0x105   :  { %v154_v22 = vadd.f32 %v147_v19, %v128_v21  ;;  %v130_v23 = vpop.f32.mrb[1].mxu0 }
 0x106   :  { %v155_v24 = vadd.f32 %v151_v20, %v130_v23 }
 0x107   :  { %v187_v25 = vmul.f32 -1.442695, %v154_v22 }
 0x108   :  { %v188_v26 = vmul.f32 -1.442695, %v155_v24 }
 0x109   :  { %203 = vpow2.f32 %v187_v25 }
 0x10a   :  { %205 = vpow2.f32 %v188_v26 }
 0x113   :  { %v204_v27 = vpop.eup %203 }
 0x114   :  { %v206_v28 = vpop.eup %205  ;;  %v162_v29 = vadd.f32 1.0, %v204_v27 }
 0x115   :  { %v163_v30 = vadd.f32 1.0, %v206_v28 }
 0x116   :  { %207 = vrcp.f32 %v162_v29 }
 0x117   :  { %209 = vrcp.f32 %v163_v30 }
 0x120   :  { %v208_v31 = vpop.eup %207 }
 0x121   :  { %v210_v32 = vpop.eup %209  ;;  %168 = vst [vmem:[#allocation8] sm:$0xff] %v208_v31 }
 0x122   :  { %169 = vst [vmem:[#allocation8 + $0x8] sm:$0xff] %v210_v32 }
 0x123   :  { %266 = shalt.err (!%p263_p6)
}
 0x124   :  { %s267_s15 = scalar_lea.hbm %s358_s3, 256 }
 0x125   :  { %p268_p7 = scmp.ne.s32.totalorder %s358_s3, %s267_s15  ;;  %p271_p8 = scmp.lt.u32.totalorder %s267_s15, %s358_s3 }
 0x127   :  { %p273_p9 = pnand %p271_p8, %p268_p7 }
 0x129   :  { %276 = shalt.err (!%p273_p9)
}
 0x12a   :  { %179 = dma.vmem_to_hbm [thread:$0]  %s177_s12, 256, %s358_s3, [#allocation5]  }
 0x12b   :  { %281 = dma.done.wait [#allocation5], 256  }
 0x12c   :  { %282 = vsyncadd [#allocation5], 4294967040 }
 0x12d   :  { %183 = vsyncpa [#allocation4], 1 }
 0x12e   :  { %184 = vsyncpa [#allocation7], 1 }
 0x12f   :  { %185 = vsyncpa [#allocation5], 1 }

</bundles_post_ra>
